<compile_context>
chip_gen: v7x
topology: tpu7x:2x2x1
jax: 0.10.0
libtpu: 0.0.40
codegen_flags: <defaults>
</compile_context>

<pallas_src>
import jax
import jax.numpy as jnp
from jax.experimental import pallas as pl
from jax.experimental.pallas import tpu as pltpu


def _spectral_mul_kernel(ar_ref, ai_ref, wr_ref, wi_ref, or_ref, oi_ref):
    # ar/ai: (I, B, TM), wr/wi: (I, O, TM), or/oi: (B, O, TM) — f32, lane = modes.
    I, B, TM = ar_ref.shape
    O = wr_ref.shape[1]

    def body(i, carry):
        p1, p2, p3 = carry
        ar_i = ar_ref[i]          # (B, TM)
        ai_i = ai_ref[i]          # (B, TM)
        wr_i = wr_ref[i]          # (O, TM)
        wi_i = wi_ref[i]          # (O, TM)
        as_i = ar_i + ai_i
        ws_i = wr_i + wi_i
        # Only a (B, O, TM) temporary per step — no 4D broadcast intermediate.
        p1 = p1 + ar_i[:, None, :] * wr_i[None, :, :]
        p2 = p2 + ai_i[:, None, :] * wi_i[None, :, :]
        p3 = p3 + as_i[:, None, :] * ws_i[None, :, :]
        return p1, p2, p3

    zeros = jnp.zeros((B, O, TM), jnp.float32)
    p1, p2, p3 = jax.lax.fori_loop(0, I, body, (zeros, zeros, zeros), unroll=True)
    or_ref[...] = p1 - p2           # real part
    oi_ref[...] = p3 - p1 - p2      # imag part (Gauss trick)


def _split_pad(x, M, M_pad):
    """x: (..., m1, m2) complex -> (re, im) f32 arrays of shape (..., M_pad)."""
    flat = x.reshape(x.shape[:-2] + (M,))
    pad = [(0, 0)] * (flat.ndim - 1) + [(0, M_pad - M)]
    re = jnp.pad(jnp.real(flat).astype(jnp.float32), pad)
    im = jnp.pad(jnp.imag(flat).astype(jnp.float32), pad)
    return re, im


def _pick_lane_tile(m_pad, cap=2048):
    """Largest multiple-of-128 divisor of m_pad that is <= cap."""
    for cand in range(min(m_pad, cap), 0, -128):
        if m_pad % cand == 0:
            return cand
    return 128


def spectral_compl_mul2d(a_top, a_bot, w1, w2):
    """Fused Pallas version of the two torch.einsum('bixy,ioxy->boxy') calls.

    a_top/a_bot: (B, I, m1, m2) complex64 mode-corner slices of x_ft.
    w1/w2:       (I, O, m1, m2) complex64 weights.
    Returns (o_top, o_bot), each (B, O, m1, m2) complex64.
    """
    B, I, m1, m2 = a_top.shape
    O = w1.shape[1]
    M = m1 * m2
    M_pad = -(-M // 128) * 128          # lane-dense: pad to a multiple of 128
    TM = _pick_lane_tile(M_pad)

    # Activations: (2, I, B, M_pad); weights: (2, I, O, M_pad).
    a = jnp.transpose(jnp.stack([a_top, a_bot], axis=0), (0, 2, 1, 3, 4))
    w = jnp.stack([w1, w2], axis=0)
    ar, ai = _split_pad(a, M, M_pad)
    wr, wi = _split_pad(w, M, M_pad)

    out_re, out_im = pl.pallas_call(
        _spectral_mul_kernel,
        out_shape=(jax.ShapeDtypeStruct((2, B, O, M_pad), jnp.float32),
                   jax.ShapeDtypeStruct((2, B, O, M_pad), jnp.float32)),
        grid_spec=pltpu.PrefetchScalarGridSpec(
            num_scalar_prefetch=0,
            grid=(2, M_pad // TM),
            in_specs=[
                pl.BlockSpec((None, I, B, TM), lambda s, j: (s, 0, 0, j)),
                pl.BlockSpec((None, I, B, TM), lambda s, j: (s, 0, 0, j)),
                pl.BlockSpec((None, I, O, TM), lambda s, j: (s, 0, 0, j)),
                pl.BlockSpec((None, I, O, TM), lambda s, j: (s, 0, 0, j)),
            ],
            out_specs=(
                pl.BlockSpec((None, B, O, TM), lambda s, j: (s, 0, 0, j)),
                pl.BlockSpec((None, B, O, TM), lambda s, j: (s, 0, 0, j)),
            ),
        ),
        compiler_params=pltpu.CompilerParams(
            dimension_semantics=("parallel", "parallel"),
            vmem_limit_bytes=32 * 1024 * 1024,
        ),
    )(ar, ai, wr, wi)

    out = (out_re + 1j * out_im).astype(jnp.complex64)[..., :M]
    out = out.reshape(2, B, O, m1, m2)
    return out[0], out[1]


class SpectralConv2d:
    def __init__(self, in_channels, out_channels, modes1, modes2, key):
        self.in_channels = in_channels
        self.out_channels = out_channels
        self.modes1 = modes1
        self.modes2 = modes2
        self.scale = 1.0 / (in_channels * out_channels)
        k1, k2, k3, k4 = jax.random.split(key, 4)
        shape = (in_channels, out_channels, modes1, modes2)
        # torch.rand(..., dtype=torch.cfloat): U[0,1) for both real and imag parts.
        self.weights1 = (self.scale * (jax.random.uniform(k1, shape)
                                       + 1j * jax.random.uniform(k2, shape))
                         ).astype(jnp.complex64)
        self.weights2 = (self.scale * (jax.random.uniform(k3, shape)
                                       + 1j * jax.random.uniform(k4, shape))
                         ).astype(jnp.complex64)

    def __call__(self, x, size=None):
        # Matches the PyTorch module: size defaults to x.size(-1) and the output
        # spatial grid is (size, size).
        if size is None:
            size = x.shape[-1]
        batchsize = x.shape[0]
        m1, m2 = self.modes1, self.modes2
        x_ft = jnp.fft.rfftn(x, axes=(2, 3))                       # (B, Cin, H, W//2+1) c64
        # Both mode corners go through ONE fused Pallas kernel call.
        o1, o2 = spectral_compl_mul2d(x_ft[:, :, :m1, :m2],
                                      x_ft[:, :, -m1:, :m2],
                                      self.weights1, self.weights2)
        out_ft = jnp.zeros((batchsize, self.out_channels, size, size // 2 + 1),
                           dtype=jnp.complex64)
        out_ft = out_ft.at[:, :, :m1, :m2].set(o1)
        out_ft = out_ft.at[:, :, -m1:, :m2].set(o2)
        x_out = jnp.fft.irfftn(out_ft, s=(size, size), axes=(2, 3))  # (B, Cout, size, size) f32
        return x_out


def _reference_forward(module, x):
    """Pure-JAX reference (jnp.einsum instead of the Pallas kernel)."""
    size = x.shape[-1]
    x_ft = jnp.fft.rfftn(x, axes=(2, 3))
    m1, m2 = module.modes1, module.modes2
    o1 = jnp.einsum('bixy,ioxy->boxy', x_ft[:, :, :m1, :m2], module.weights1)
    o2 = jnp.einsum('bixy,ioxy->boxy', x_ft[:, :, -m1:, :m2], module.weights2)
    out_ft = jnp.zeros((x.shape[0], module.out_channels, size, size // 2 + 1),
                       dtype=jnp.complex64)
    out_ft = out_ft.at[:, :, :m1, :m2].set(o1)
    out_ft = out_ft.at[:, :, -m1:, :m2].set(o2)
    return jnp.fft.irfftn(out_ft, s=(size, size), axes=(2, 3))


if __name__ == "__main__":
    key = jax.random.PRNGKey(0)
    k_x, k_w = jax.random.split(key)

    B, C_in, C_out, H, W = 2, 4, 4, 16, 16
    modes1, modes2 = 4, 4

    x = jax.random.normal(k_x, (B, C_in, H, W), dtype=jnp.float32)

    module = SpectralConv2d(C_in, C_out, modes1, modes2, k_w)

    out = module(x)
    out = jax.block_until_ready(out)
    assert out.shape == (B, C_out, H, W), out.shape
    assert out.dtype == jnp.float32, out.dtype

    ref = jax.block_until_ready(_reference_forward(module, x))
    assert jnp.allclose(out, ref, atol=1e-5, rtol=1e-4), \
        float(jnp.max(jnp.abs(out - ref)))

    print("KERNEL_OK")
</pallas_src>

<mosaic_0001>
module attributes {stable_mosaic.version = 11 : i64} {
  func.func @_spectral_mul_kernel(%arg0: i32, %arg1: i32, %arg2: memref<1x4x2x128xf32, #tpu.memory_space<vmem>>, %arg3: memref<1x4x2x128xf32, #tpu.memory_space<vmem>>, %arg4: memref<1x4x4x128xf32, #tpu.memory_space<vmem>>, %arg5: memref<1x4x4x128xf32, #tpu.memory_space<vmem>>, %arg6: memref<1x2x4x128xf32, #tpu.memory_space<vmem>>, %arg7: memref<1x2x4x128xf32, #tpu.memory_space<vmem>>) attributes {dimension_semantics = [#tpu.dimension_semantics<parallel>, #tpu.dimension_semantics<parallel>], iteration_bounds = array<i64: 2, 1>, scalar_prefetch = 0 : i64, scratch_operands = 0 : i64, tpu.core_type = #tpu.core_type<tc>, window_params = [{transform_indices = @transform_0, window_bounds = array<i64: 1, 4, 2, 128>}, {transform_indices = @transform_1, window_bounds = array<i64: 1, 4, 2, 128>}, {transform_indices = @transform_2, window_bounds = array<i64: 1, 4, 4, 128>}, {transform_indices = @transform_3, window_bounds = array<i64: 1, 4, 4, 128>}, {transform_indices = @transform_4, window_bounds = array<i64: 1, 2, 4, 128>}, {transform_indices = @transform_5, window_bounds = array<i64: 1, 2, 4, 128>}]} {
    %cst = arith.constant 0.000000e+00 : f32
    %0 = vector.broadcast %cst : f32 to vector<2x4x128xf32>
    %c0_i32 = arith.constant 0 : i32
    %c0 = arith.constant 0 : index
    %1 = arith.index_cast %c0_i32 : i32 to index
    %c0_0 = arith.constant 0 : index
    %c0_1 = arith.constant 0 : index
    %2 = vector.load %arg2[%c0, %1, %c0_0, %c0_1] : memref<1x4x2x128xf32, #tpu.memory_space<vmem>>, vector<1x1x2x128xf32>
    %3 = vector.shape_cast %2 : vector<1x1x2x128xf32> to vector<2x128xf32>
    %c0_2 = arith.constant 0 : index
    %4 = arith.index_cast %c0_i32 : i32 to index
    %c0_3 = arith.constant 0 : index
    %c0_4 = arith.constant 0 : index
    %5 = vector.load %arg3[%c0_2, %4, %c0_3, %c0_4] : memref<1x4x2x128xf32, #tpu.memory_space<vmem>>, vector<1x1x2x128xf32>
    %6 = vector.shape_cast %5 : vector<1x1x2x128xf32> to vector<2x128xf32>
    %c0_5 = arith.constant 0 : index
    %7 = arith.index_cast %c0_i32 : i32 to index
    %c0_6 = arith.constant 0 : index
    %c0_7 = arith.constant 0 : index
    %8 = vector.load %arg4[%c0_5, %7, %c0_6, %c0_7] : memref<1x4x4x128xf32, #tpu.memory_space<vmem>>, vector<1x1x4x128xf32>
    %9 = vector.shape_cast %8 : vector<1x1x4x128xf32> to vector<4x128xf32>
    %c0_8 = arith.constant 0 : index
    %10 = arith.index_cast %c0_i32 : i32 to index
    %c0_9 = arith.constant 0 : index
    %c0_10 = arith.constant 0 : index
    %11 = vector.load %arg5[%c0_8, %10, %c0_9, %c0_10] : memref<1x4x4x128xf32, #tpu.memory_space<vmem>>, vector<1x1x4x128xf32>
    %12 = vector.shape_cast %11 : vector<1x1x4x128xf32> to vector<4x128xf32>
    %13 = arith.addf %3, %6 : vector<2x128xf32>
    %14 = arith.addf %9, %12 : vector<4x128xf32>
    %15 = vector.shape_cast %3 : vector<2x128xf32> to vector<2x1x128xf32>
    %16 = vector.shape_cast %9 : vector<4x128xf32> to vector<1x4x128xf32>
    %17 = vector.broadcast %15 : vector<2x1x128xf32> to vector<2x4x128xf32>
    %18 = vector.broadcast %16 : vector<1x4x128xf32> to vector<2x4x128xf32>
    %19 = arith.mulf %17, %18 : vector<2x4x128xf32>
    %20 = arith.addf %0, %19 : vector<2x4x128xf32>
    %21 = vector.shape_cast %6 : vector<2x128xf32> to vector<2x1x128xf32>
    %22 = vector.shape_cast %12 : vector<4x128xf32> to vector<1x4x128xf32>
    %23 = vector.broadcast %21 : vector<2x1x128xf32> to vector<2x4x128xf32>
    %24 = vector.broadcast %22 : vector<1x4x128xf32> to vector<2x4x128xf32>
    %25 = arith.mulf %23, %24 : vector<2x4x128xf32>
    %26 = arith.addf %0, %25 : vector<2x4x128xf32>
    %27 = vector.shape_cast %13 : vector<2x128xf32> to vector<2x1x128xf32>
    %28 = vector.shape_cast %14 : vector<4x128xf32> to vector<1x4x128xf32>
    %29 = vector.broadcast %27 : vector<2x1x128xf32> to vector<2x4x128xf32>
    %30 = vector.broadcast %28 : vector<1x4x128xf32> to vector<2x4x128xf32>
    %31 = arith.mulf %29, %30 : vector<2x4x128xf32>
    %32 = arith.addf %0, %31 : vector<2x4x128xf32>
    %c1_i32 = arith.constant 1 : i32
    %c0_11 = arith.constant 0 : index
    %33 = arith.index_cast %c1_i32 : i32 to index
    %c0_12 = arith.constant 0 : index
    %c0_13 = arith.constant 0 : index
    %34 = vector.load %arg2[%c0_11, %33, %c0_12, %c0_13] : memref<1x4x2x128xf32, #tpu.memory_space<vmem>>, vector<1x1x2x128xf32>
    %35 = vector.shape_cast %34 : vector<1x1x2x128xf32> to vector<2x128xf32>
    %c0_14 = arith.constant 0 : index
    %36 = arith.index_cast %c1_i32 : i32 to index
    %c0_15 = arith.constant 0 : index
    %c0_16 = arith.constant 0 : index
    %37 = vector.load %arg3[%c0_14, %36, %c0_15, %c0_16] : memref<1x4x2x128xf32, #tpu.memory_space<vmem>>, vector<1x1x2x128xf32>
    %38 = vector.shape_cast %37 : vector<1x1x2x128xf32> to vector<2x128xf32>
    %c0_17 = arith.constant 0 : index
    %39 = arith.index_cast %c1_i32 : i32 to index
    %c0_18 = arith.constant 0 : index
    %c0_19 = arith.constant 0 : index
    %40 = vector.load %arg4[%c0_17, %39, %c0_18, %c0_19] : memref<1x4x4x128xf32, #tpu.memory_space<vmem>>, vector<1x1x4x128xf32>
    %41 = vector.shape_cast %40 : vector<1x1x4x128xf32> to vector<4x128xf32>
    %c0_20 = arith.constant 0 : index
    %42 = arith.index_cast %c1_i32 : i32 to index
    %c0_21 = arith.constant 0 : index
    %c0_22 = arith.constant 0 : index
    %43 = vector.load %arg5[%c0_20, %42, %c0_21, %c0_22] : memref<1x4x4x128xf32, #tpu.memory_space<vmem>>, vector<1x1x4x128xf32>
    %44 = vector.shape_cast %43 : vector<1x1x4x128xf32> to vector<4x128xf32>
    %45 = arith.addf %35, %38 : vector<2x128xf32>
    %46 = arith.addf %41, %44 : vector<4x128xf32>
    %47 = vector.shape_cast %35 : vector<2x128xf32> to vector<2x1x128xf32>
    %48 = vector.shape_cast %41 : vector<4x128xf32> to vector<1x4x128xf32>
    %49 = vector.broadcast %47 : vector<2x1x128xf32> to vector<2x4x128xf32>
    %50 = vector.broadcast %48 : vector<1x4x128xf32> to vector<2x4x128xf32>
    %51 = arith.mulf %49, %50 : vector<2x4x128xf32>
    %52 = arith.addf %20, %51 : vector<2x4x128xf32>
    %53 = vector.shape_cast %38 : vector<2x128xf32> to vector<2x1x128xf32>
    %54 = vector.shape_cast %44 : vector<4x128xf32> to vector<1x4x128xf32>
    %55 = vector.broadcast %53 : vector<2x1x128xf32> to vector<2x4x128xf32>
    %56 = vector.broadcast %54 : vector<1x4x128xf32> to vector<2x4x128xf32>
    %57 = arith.mulf %55, %56 : vector<2x4x128xf32>
    %58 = arith.addf %26, %57 : vector<2x4x128xf32>
    %59 = vector.shape_cast %45 : vector<2x128xf32> to vector<2x1x128xf32>
    %60 = vector.shape_cast %46 : vector<4x128xf32> to vector<1x4x128xf32>
    %61 = vector.broadcast %59 : vector<2x1x128xf32> to vector<2x4x128xf32>
    %62 = vector.broadcast %60 : vector<1x4x128xf32> to vector<2x4x128xf32>
    %63 = arith.mulf %61, %62 : vector<2x4x128xf32>
    %64 = arith.addf %32, %63 : vector<2x4x128xf32>
    %c2_i32 = arith.constant 2 : i32
    %c0_23 = arith.constant 0 : index
    %65 = arith.index_cast %c2_i32 : i32 to index
    %c0_24 = arith.constant 0 : index
    %c0_25 = arith.constant 0 : index
    %66 = vector.load %arg2[%c0_23, %65, %c0_24, %c0_25] : memref<1x4x2x128xf32, #tpu.memory_space<vmem>>, vector<1x1x2x128xf32>
    %67 = vector.shape_cast %66 : vector<1x1x2x128xf32> to vector<2x128xf32>
    %c0_26 = arith.constant 0 : index
    %68 = arith.index_cast %c2_i32 : i32 to index
    %c0_27 = arith.constant 0 : index
    %c0_28 = arith.constant 0 : index
    %69 = vector.load %arg3[%c0_26, %68, %c0_27, %c0_28] : memref<1x4x2x128xf32, #tpu.memory_space<vmem>>, vector<1x1x2x128xf32>
    %70 = vector.shape_cast %69 : vector<1x1x2x128xf32> to vector<2x128xf32>
    %c0_29 = arith.constant 0 : index
    %71 = arith.index_cast %c2_i32 : i32 to index
    %c0_30 = arith.constant 0 : index
    %c0_31 = arith.constant 0 : index
    %72 = vector.load %arg4[%c0_29, %71, %c0_30, %c0_31] : memref<1x4x4x128xf32, #tpu.memory_space<vmem>>, vector<1x1x4x128xf32>
    %73 = vector.shape_cast %72 : vector<1x1x4x128xf32> to vector<4x128xf32>
    %c0_32 = arith.constant 0 : index
    %74 = arith.index_cast %c2_i32 : i32 to index
    %c0_33 = arith.constant 0 : index
    %c0_34 = arith.constant 0 : index
    %75 = vector.load %arg5[%c0_32, %74, %c0_33, %c0_34] : memref<1x4x4x128xf32, #tpu.memory_space<vmem>>, vector<1x1x4x128xf32>
    %76 = vector.shape_cast %75 : vector<1x1x4x128xf32> to vector<4x128xf32>
    %77 = arith.addf %67, %70 : vector<2x128xf32>
    %78 = arith.addf %73, %76 : vector<4x128xf32>
    %79 = vector.shape_cast %67 : vector<2x128xf32> to vector<2x1x128xf32>
    %80 = vector.shape_cast %73 : vector<4x128xf32> to vector<1x4x128xf32>
    %81 = vector.broadcast %79 : vector<2x1x128xf32> to vector<2x4x128xf32>
    %82 = vector.broadcast %80 : vector<1x4x128xf32> to vector<2x4x128xf32>
    %83 = arith.mulf %81, %82 : vector<2x4x128xf32>
    %84 = arith.addf %52, %83 : vector<2x4x128xf32>
    %85 = vector.shape_cast %70 : vector<2x128xf32> to vector<2x1x128xf32>
    %86 = vector.shape_cast %76 : vector<4x128xf32> to vector<1x4x128xf32>
    %87 = vector.broadcast %85 : vector<2x1x128xf32> to vector<2x4x128xf32>
    %88 = vector.broadcast %86 : vector<1x4x128xf32> to vector<2x4x128xf32>
    %89 = arith.mulf %87, %88 : vector<2x4x128xf32>
    %90 = arith.addf %58, %89 : vector<2x4x128xf32>
    %91 = vector.shape_cast %77 : vector<2x128xf32> to vector<2x1x128xf32>
    %92 = vector.shape_cast %78 : vector<4x128xf32> to vector<1x4x128xf32>
    %93 = vector.broadcast %91 : vector<2x1x128xf32> to vector<2x4x128xf32>
    %94 = vector.broadcast %92 : vector<1x4x128xf32> to vector<2x4x128xf32>
    %95 = arith.mulf %93, %94 : vector<2x4x128xf32>
    %96 = arith.addf %64, %95 : vector<2x4x128xf32>
    %c3_i32 = arith.constant 3 : i32
    %c0_35 = arith.constant 0 : index
    %97 = arith.index_cast %c3_i32 : i32 to index
    %c0_36 = arith.constant 0 : index
    %c0_37 = arith.constant 0 : index
    %98 = vector.load %arg2[%c0_35, %97, %c0_36, %c0_37] : memref<1x4x2x128xf32, #tpu.memory_space<vmem>>, vector<1x1x2x128xf32>
    %99 = vector.shape_cast %98 : vector<1x1x2x128xf32> to vector<2x128xf32>
    %c0_38 = arith.constant 0 : index
    %100 = arith.index_cast %c3_i32 : i32 to index
    %c0_39 = arith.constant 0 : index
    %c0_40 = arith.constant 0 : index
    %101 = vector.load %arg3[%c0_38, %100, %c0_39, %c0_40] : memref<1x4x2x128xf32, #tpu.memory_space<vmem>>, vector<1x1x2x128xf32>
    %102 = vector.shape_cast %101 : vector<1x1x2x128xf32> to vector<2x128xf32>
    %c0_41 = arith.constant 0 : index
    %103 = arith.index_cast %c3_i32 : i32 to index
    %c0_42 = arith.constant 0 : index
    %c0_43 = arith.constant 0 : index
    %104 = vector.load %arg4[%c0_41, %103, %c0_42, %c0_43] : memref<1x4x4x128xf32, #tpu.memory_space<vmem>>, vector<1x1x4x128xf32>
    %105 = vector.shape_cast %104 : vector<1x1x4x128xf32> to vector<4x128xf32>
    %c0_44 = arith.constant 0 : index
    %106 = arith.index_cast %c3_i32 : i32 to index
    %c0_45 = arith.constant 0 : index
    %c0_46 = arith.constant 0 : index
    %107 = vector.load %arg5[%c0_44, %106, %c0_45, %c0_46] : memref<1x4x4x128xf32, #tpu.memory_space<vmem>>, vector<1x1x4x128xf32>
    %108 = vector.shape_cast %107 : vector<1x1x4x128xf32> to vector<4x128xf32>
    %109 = arith.addf %99, %102 : vector<2x128xf32>
    %110 = arith.addf %105, %108 : vector<4x128xf32>
    %111 = vector.shape_cast %99 : vector<2x128xf32> to vector<2x1x128xf32>
    %112 = vector.shape_cast %105 : vector<4x128xf32> to vector<1x4x128xf32>
    %113 = vector.broadcast %111 : vector<2x1x128xf32> to vector<2x4x128xf32>
    %114 = vector.broadcast %112 : vector<1x4x128xf32> to vector<2x4x128xf32>
    %115 = arith.mulf %113, %114 : vector<2x4x128xf32>
    %116 = arith.addf %84, %115 : vector<2x4x128xf32>
    %117 = vector.shape_cast %102 : vector<2x128xf32> to vector<2x1x128xf32>
    %118 = vector.shape_cast %108 : vector<4x128xf32> to vector<1x4x128xf32>
    %119 = vector.broadcast %117 : vector<2x1x128xf32> to vector<2x4x128xf32>
    %120 = vector.broadcast %118 : vector<1x4x128xf32> to vector<2x4x128xf32>
    %121 = arith.mulf %119, %120 : vector<2x4x128xf32>
    %122 = arith.addf %90, %121 : vector<2x4x128xf32>
    %123 = vector.shape_cast %109 : vector<2x128xf32> to vector<2x1x128xf32>
    %124 = vector.shape_cast %110 : vector<4x128xf32> to vector<1x4x128xf32>
    %125 = vector.broadcast %123 : vector<2x1x128xf32> to vector<2x4x128xf32>
    %126 = vector.broadcast %124 : vector<1x4x128xf32> to vector<2x4x128xf32>
    %127 = arith.mulf %125, %126 : vector<2x4x128xf32>
    %128 = arith.addf %96, %127 : vector<2x4x128xf32>
    %c4_i32 = arith.constant 4 : i32
    %129 = arith.subf %116, %122 : vector<2x4x128xf32>
    %c0_47 = arith.constant 0 : index
    %c0_48 = arith.constant 0 : index
    %c0_49 = arith.constant 0 : index
    %c0_50 = arith.constant 0 : index
    %130 = vector.load %arg6[%c0_47, %c0_48, %c0_49, %c0_50] : memref<1x2x4x128xf32, #tpu.memory_space<vmem>>, vector<1x2x4x128xf32>
    %131 = vector.shape_cast %130 : vector<1x2x4x128xf32> to vector<2x4x128xf32>
    %132 = vector.shape_cast %129 : vector<2x4x128xf32> to vector<1x2x4x128xf32>
    tpu.vector_store %arg6[%c0_47, %c0_48, %c0_49, %c0_50], %132 {strides = array<i32>} : memref<1x2x4x128xf32, #tpu.memory_space<vmem>>, vector<1x2x4x128xf32>,
    %133 = arith.subf %128, %116 : vector<2x4x128xf32>
    %134 = arith.subf %133, %122 : vector<2x4x128xf32>
    %c0_51 = arith.constant 0 : index
    %c0_52 = arith.constant 0 : index
    %c0_53 = arith.constant 0 : index
    %c0_54 = arith.constant 0 : index
    %135 = vector.load %arg7[%c0_51, %c0_52, %c0_53, %c0_54] : memref<1x2x4x128xf32, #tpu.memory_space<vmem>>, vector<1x2x4x128xf32>
    %136 = vector.shape_cast %135 : vector<1x2x4x128xf32> to vector<2x4x128xf32>
    %137 = vector.shape_cast %134 : vector<2x4x128xf32> to vector<1x2x4x128xf32>
    tpu.vector_store %arg7[%c0_51, %c0_52, %c0_53, %c0_54], %137 {strides = array<i32>} : memref<1x2x4x128xf32, #tpu.memory_space<vmem>>, vector<1x2x4x128xf32>,
    return
  }
  func.func @transform_0(%arg0: i32, %arg1: i32) -> (i32, i32, i32, i32) {
    %c0_i32 = arith.constant 0 : i32
    %c0_i32_0 = arith.constant 0 : i32
    %c0_i32_1 = arith.constant 0 : i32
    return %arg0, %c0_i32, %c0_i32_0, %arg1 : i32, i32, i32, i32
  }
  func.func @transform_1(%arg0: i32, %arg1: i32) -> (i32, i32, i32, i32) {
    %c0_i32 = arith.constant 0 : i32
    %c0_i32_0 = arith.constant 0 : i32
    %c0_i32_1 = arith.constant 0 : i32
    return %arg0, %c0_i32, %c0_i32_0, %arg1 : i32, i32, i32, i32
  }
  func.func @transform_2(%arg0: i32, %arg1: i32) -> (i32, i32, i32, i32) {
    %c0_i32 = arith.constant 0 : i32
    %c0_i32_0 = arith.constant 0 : i32
    %c0_i32_1 = arith.constant 0 : i32
    return %arg0, %c0_i32, %c0_i32_0, %arg1 : i32, i32, i32, i32
  }
  func.func @transform_3(%arg0: i32, %arg1: i32) -> (i32, i32, i32, i32) {
    %c0_i32 = arith.constant 0 : i32
    %c0_i32_0 = arith.constant 0 : i32
    %c0_i32_1 = arith.constant 0 : i32
    return %arg0, %c0_i32, %c0_i32_0, %arg1 : i32, i32, i32, i32
  }
  func.func @transform_4(%arg0: i32, %arg1: i32) -> (i32, i32, i32, i32) {
    %c0_i32 = arith.constant 0 : i32
    %c0_i32_0 = arith.constant 0 : i32
    %c0_i32_1 = arith.constant 0 : i32
    return %arg0, %c0_i32, %c0_i32_0, %arg1 : i32, i32, i32, i32
  }
  func.func @transform_5(%arg0: i32, %arg1: i32) -> (i32, i32, i32, i32) {
    %c0_i32 = arith.constant 0 : i32
    %c0_i32_0 = arith.constant 0 : i32
    %c0_i32_1 = arith.constant 0 : i32
    return %arg0, %c0_i32, %c0_i32_0, %arg1 : i32, i32, i32, i32
  }
}

</mosaic_0001>

<bundles_post_ra>
// kernel: tpu_custom_call.1
= control target key start
LH: loop header
LB: loop body
LE: loop exit
PB: predicated region body
PF: predicated region fallthrough
CT: control target
= control target key end

     0   :  { %s2056_s0 = inlined_call_operand.hbm [shape: f32[2,4,2,128], index: 0, kind: input, shape index: {}]   ;;  %s2057_s1 = inlined_call_operand.hbm [shape: f32[2,4,2,128], index: 1, kind: input, shape index: {}]   ;;  %s2058_s2 = inlined_call_operand.hbm [shape: f32[2,4,4,128], index: 2, kind: input, shape index: {}]   ;;  %s2059_s3 = inlined_call_operand.hbm [shape: f32[2,4,4,128], index: 3, kind: input, shape index: {}]   ;;  %s2060_s4 = inlined_call_operand.hbm [shape: f32[2,2,4,128], index: 4, kind: output, shape index: {0}]   ;;  %s2061_s5 = inlined_call_operand.hbm [shape: f32[2,2,4,128], index: 5, kind: output, shape index: {1}]  }
   0x1   :  { %2070 = sst [smem:[#allocation21_spill]] %s2056_s0 }
   0x2   :  { %2071 = sst [smem:[#allocation22_spill]] %s2057_s1 }
   0x3   :  { %11 = vsyncpa [#allocation3], 0 }
   0x4   :  { %13 = vsyncpa [#allocation3 + $0x1], 0 }
   0x5   :  { %14 = vsyncpa [#allocation6], 0 }
   0x6   :  { %16 = vsyncpa [#allocation6 + $0x1], 0 }
   0x7   :  { %17 = vsyncpa [#allocation9], 0 }
   0x8   :  { %19 = vsyncpa [#allocation9 + $0x1], 0 }
   0x9   :  { %20 = vsyncpa [#allocation4], 0 }
   0xa   :  { %22 = vsyncpa [#allocation4 + $0x1], 0 }
   0xb   :  { %23 = vsyncpa [#allocation12], 0 }
   0xc   :  { %25 = vsyncpa [#allocation12 + $0x1], 0  ;;  %s1542_s18 = smov 0   ;;  %s1544_s19 = smov 0  }
   0xd   :  { %s1546_s20 = smov 0   ;;  %s1548_s21 = smov 0  }
   0xe   :  { %s1550_s22 = smov 0   ;;  %s1552_s23 = smov 0  }
   0xf LB: > { %2072 = sst [smem:[#allocation18_spill]] %s1485_s20  ;;  %s1573_s24 = sadd.s32 4294967295, %s1497_s23   ;;  %s1497_s23 = sphi %s1552_s23, %s31_s23   ;;  %s1493_s22 = sphi %s1550_s22, %s2101_s22   ;;  %s1489_s21 = sphi %s1548_s21, %s2100_s21   ;;  %s1485_s20 = sphi %s1546_s20, %s2096_s20   ;;  %s1481_s19 = sphi %s1544_s19, %s2099_s19   ;;  %s1477_s18 = sphi %s1542_s18, %s2098_s18  }
  0x10   : > { %s1118_s25 = sadd.s32 4294967294, %s1497_s23   ;;  %s43_s26 = sadd.s32 1, %s1493_s22 }
  0x11   : > { %s52_s27 = sadd.s32 1, %s1485_s20  ;;  %p45_p0 = scmp.ge.s32.totalorder %s43_s26, 2 }
  0x12   : > { %p59_p1 = scmp.ne.s32.totalorder %s1485_s20, %s1481_s19  ;;  %p60_p2 = scmp.eq.s32.totalorder %s1497_s23, 0 }
  0x13   : > { %p65_p3 = scmp.ne.s32.totalorder %s1481_s19, %s1477_s18  ;;  %s2103_s26 = smov (%p45_p0, %s43_s26), 0 }
  0x14   : > { %2073 = sst [smem:[#allocation19_spill]] %s2103_s26  ;;  %p1585_p4 = por %p60_p2, %p59_p1 }
  0x15   : > { %p66_p5 = scmp.eq.s32.totalorder %s1573_s24, 0  ;;  %s47_s29 = ssub.s32 %s1493_s22, %s2103_s26 }
  0x16   : > { %p175_p6 = scmp.eq.s32.totalorder %s1573_s24, 1  ;;  %p50_p7 = scmp.eq.s32.totalorder %s47_s29, 0 }
  0x17   : > { %p1593_p8 = por %p66_p5, %p65_p3  ;;  %p181_p10 = scmp.eq.s32.totalorder %s1118_s25, 1 }
  0x18   : > { %p1597_p9 = por %p175_p6, %p59_p1  ;;  %p1198_p13 = scmp.lt.s32.totalorder %s1497_s23, 2 }
  0x19   : > { %s2075_s30 = scalar_select %p1593_p8, 1, 0 }
  0x1a   : > { %s2076_s6 = scalar_select %p1597_p9, 1, 0 }
  0x1b   : > { %s1602_s7 = scalar_select %p50_p7, %s1485_s20, %s52_s27  }
  0x1c   : > { %p1604_p11 = por %p181_p10, %p65_p3  ;;  %s1611_s9 = sand.u32 1, %s1485_s20  }
  0x1d   : > { %2077 = sst [smem:[#allocation20_spill]] %s1602_s7  ;;  %s2062_s10 = sshll.u32 %s1611_s9, 3 }
  0x1e   : > { %s2078_s8 = scalar_select %p1604_p11, 1, 0 }
  0x1f   : > { %s2063_s11 = sshll.u32 %s1493_s22, 7  ;;  %p1617_p0 = pnand %p1198_p13, %p1585_p4 }
  0x20   : > { %s251_s13 = sand.u32 1, %s1497_s23   ;;  %s2080_s1 = sld [smem:[#allocation22_spill]] }
  0x21   : > { %s255_s17 = scalar_lea.vmem [#allocation5], %s2062_s10  ;;  %s1635_s27 = scalar_lea.sflag [#allocation6], %s251_s13 }
  0x22   : > { %s263_s25 = sshll.u32 %s255_s17, 4  ;;  %p1641_p4 = pneg %p1617_p0  ;;  %s1632_s25 = int_to_ptr.vmem [resolvable:$true] %s263_s25 }
  0x26   : > { %s1627_s16 = scalar_lea.hbm %s2080_s1, %s2063_s11  ;;  %s1260_s17 = scalar_lea.hbm %s2080_s1, 256 }
  0x27   : > { %s1255_s28 = scalar_lea.hbm %s1627_s16, 128  ;;  %p1261_p7 = scmp.lt.u32.totalorder %s1627_s16, %s2080_s1 }
  0x28   : > { %p1256_p3 = scmp.ne.s32.totalorder %s1627_s16, %s1255_s28  ;;  %p1262_p10 = scmp.lt.u32.totalorder %s1260_s17, %s1255_s28 }
  0x29   : > { %p1264_p12 = scmp.lt.u32.totalorder %s1255_s28, %s1627_s16 }
  0x2a   : > { %p1258_p5 = pnand %p1641_p4, %p1256_p3  ;;  %p1263_p13 = por %p1262_p10, %p1261_p7 }
  0x2c   : > { %p1259_p6 = pneg %p1258_p5  ;;  %p1265_p1 = por %p1264_p12, %p1263_p13 }
  0x2e   : > { %p1266_p2 = pnand %p1265_p1, %p1259_p6 }
  0x30   : > { %1269 = shalt.err (!%p1266_p2)
}
  0x31   : > { %s1270_s13 = scalar_lea.vmem %s1632_s25, 128  ;;  %s1499_s14 = smov [#allocation5]  }
  0x32   : > { %p1271_p3 = scmp.ne.s32.totalorder %s1632_s25, %s1270_s13  ;;  %s1275_s15 = sshll.u32 %s1499_s14, 4  ;;  %s1276_s15 = int_to_ptr.vmem [resolvable:$false] %s1275_s15 }
  0x33   : > { %s1277_s10 = scalar_lea.vmem %s1276_s15, 256  ;;  %p1278_p9 = scmp.lt.s32.totalorder %s1632_s25, %s1276_s15 }
  0x34   : > { %p1273_p5 = pnand %p1271_p3, %p1641_p4  ;;  %p1279_p8 = scmp.lt.s32.totalorder %s1277_s10, %s1270_s13 }
  0x36   : > { %p1274_p11 = pneg %p1273_p5  ;;  %p1280_p7 = por %p1279_p8, %p1278_p9 }
  0x38   : > { %p1281_p10 = pnand %p1280_p7, %p1274_p11 }
  0x3a   : > { %1284 = shalt.err (!%p1281_p10)
}
  0x3b   : > { %s2067_s11 = smov 32   ;;  %s2068_s28 = smov 2  }
  0x3c   : > { %1184 = dma.hbm_to_vmem [thread:$0]  (!%p1617_p0), %s1627_s16, 128, %s1632_s25, %s1635_s27, %s2067_s11, %s2067_s11, %s2068_s28  }
  0x3d   : > { %p2082_p8 = scmp.lt.s32.totalorder %s1497_s23, 3  ;;  %p2083_p9 = scmp.ge.s32.totalorder %s1497_s23, 1 }
  0x3e   : > { %s2085_s13 = sshll.u32 %s1493_s22, 7  ;;  %s2086_s0 = sld [smem:[#allocation21_spill]] }
  0x3f   : > { %p1672_p11 = pnand %p2083_p9, %p2082_p8  ;;  %s2087_s1 = sshll.u32 %s1611_s9, 3 }
  0x40   : > { %s233_s26 = scalar_lea.vmem [#allocation2], %s2087_s1  ;;  %s1127_s16 = sshll.u32 %s1611_s9, 4 }
  0x41   : > { %s2084_s17 = scalar_select %p1672_p11, 1, 0 }
  0x42   : > { %s241_s7 = sshll.u32 %s233_s26, 4  ;;  %s230_s25 = scalar_lea.sflag [#allocation3], %s1611_s9  ;;  %s1686_s7 = int_to_ptr.vmem [resolvable:$true] %s241_s7 }
  0x44   : > { %s1681_s10 = scalar_lea.hbm %s2086_s0, %s2085_s13  ;;  %s1290_s13 = scalar_lea.hbm %s2086_s0, 256 }
  0x45   : > { %s1285_s11 = scalar_lea.hbm %s1681_s10, 128  ;;  %p1291_p6 = scmp.lt.u32.totalorder %s1681_s10, %s2086_s0 }
  0x46   : > { %p1286_p12 = scmp.ne.s32.totalorder %s1681_s10, %s1285_s11  ;;  %p1292_p13 = scmp.lt.u32.totalorder %s1290_s13, %s1285_s11 }
  0x47   : > { %p1294_p5 = scmp.lt.u32.totalorder %s1285_s11, %s1681_s10 }
  0x48   : > { %p1288_p1 = pnand %p1286_p12, %p1641_p4  ;;  %p1293_p3 = por %p1292_p13, %p1291_p6 }
  0x4a   : > { %p1289_p2 = pneg %p1288_p1  ;;  %p1295_p7 = por %p1294_p5, %p1293_p3 }
  0x4c   : > { %p1296_p10 = pnand %p1295_p7, %p1289_p2 }
  0x4e   : > { %1299 = shalt.err (!%p1296_p10)
}
  0x4f   : > { %s1300_s1 = scalar_lea.vmem %s1686_s7, 128  ;;  %s1502_s26 = smov [#allocation2]  }
  0x50   : > { %p1301_p8 = scmp.ne.s32.totalorder %s1686_s7, %s1300_s1  ;;  %s1305_s28 = sshll.u32 %s1502_s26, 4  ;;  %s1306_s28 = int_to_ptr.vmem [resolvable:$false] %s1305_s28 }
  0x51   : > { %s1307_s20 = scalar_lea.vmem %s1306_s28, 256  ;;  %p1308_p1 = scmp.lt.s32.totalorder %s1686_s7, %s1306_s28 }
  0x52   : > { %p1303_p9 = pnand %p1301_p8, %p1641_p4  ;;  %p1309_p11 = scmp.lt.s32.totalorder %s1307_s20, %s1300_s1 }
  0x54   : > { %p1304_p12 = pneg %p1303_p9  ;;  %p1310_p6 = por %p1309_p11, %p1308_p1 }
  0x56   : > { %p1311_p13 = pnand %p1310_p6, %p1304_p12 }
  0x58   : > { %1314 = shalt.err (!%p1311_p13)
}
  0x59   : > { %s2088_s11 = smov 2   ;;  %s2089_s14 = smov 32  }
  0x5a   : > { %1181 = dma.hbm_to_vmem [thread:$0]  (!%p1617_p0), %s1681_s10, 128, %s1686_s7, %s230_s25, %s2089_s14, %s2089_s14, %s2088_s11  }
  0x5b   : > { %s1162_s13 = sshll.u32 %s1493_s22, 8  ;;  %s277_s15 = scalar_lea.vmem [#allocation7], %s1127_s16 }
  0x5c   : > { %s285_s1 = sshll.u32 %s277_s15, 4  ;;  %s1723_s20 = scalar_lea.hbm %s2058_s2, %s1162_s13  ;;  %s1725_s1 = int_to_ptr.vmem [resolvable:$true] %s285_s1 }
  0x5d   : > { %s1315_s0 = scalar_lea.hbm %s1723_s20, 256  ;;  %s1320_s25 = scalar_lea.hbm %s2058_s2, 512 }
  0x5e   : > { %p1316_p11 = scmp.ne.s32.totalorder %s1723_s20, %s1315_s0  ;;  %p1321_p5 = scmp.lt.u32.totalorder %s1723_s20, %s2058_s2 }
  0x5f   : > { %p1322_p7 = scmp.lt.u32.totalorder %s1320_s25, %s1315_s0  ;;  %p1324_p8 = scmp.lt.u32.totalorder %s1315_s0, %s1723_s20 }
  0x60   : > { %p1318_p2 = pnand %p1316_p11, %p1641_p4 }
  0x61   : > { %p1323_p10 = por %p1322_p7, %p1321_p5 }
  0x62   : > { %p1319_p3 = pneg %p1318_p2 }
  0x63   : > { %p1325_p9 = por %p1324_p8, %p1323_p10 }
  0x65   : > { %p1326_p12 = pnand %p1325_p9, %p1319_p3 }
  0x67   : > { %1329 = shalt.err (!%p1326_p12)
}
  0x68   : > { %s1330_s15 = scalar_lea.vmem %s1725_s1, 256  ;;  %s1503_s26 = smov [#allocation7]  }
  0x69   : > { %p1331_p1 = scmp.ne.s32.totalorder %s1725_s1, %s1330_s15  ;;  %s1335_s28 = sshll.u32 %s1503_s26, 4  ;;  %s1336_s28 = int_to_ptr.vmem [resolvable:$false] %s1335_s28 }
  0x6a   : > { %s1337_s7 = scalar_lea.vmem %s1336_s28, 512  ;;  %p1338_p11 = scmp.lt.s32.totalorder %s1725_s1, %s1336_s28 }
  0x6b   : > { %p1333_p6 = pnand %p1331_p1, %p1641_p4  ;;  %p1339_p2 = scmp.lt.s32.totalorder %s1337_s7, %s1330_s15 }
  0x6d   : > { %p1334_p13 = pneg %p1333_p6  ;;  %p1340_p5 = por %p1339_p2, %p1338_p11 }
  0x6f   : > { %p1341_p7 = pnand %p1340_p5, %p1334_p13 }
  0x71   : > { %1344 = shalt.err (!%p1341_p7)
}
  0x72   : > { %s1504_s0 = smov 64   ;;  %s1505_s10 = smov 4  }
  0x73   : > { %1187 = dma.hbm_to_vmem [thread:$0]  (!%p1617_p0), %s1723_s20, 256, %s1725_s1, %s1635_s27, %s1504_s0, %s1504_s0, %s1505_s10  }
  0x74   : > { %s1757_s14 = scalar_lea.hbm %s2059_s3, %s1162_s13  ;;  %s299_s15 = scalar_lea.vmem [#allocation8], %s1127_s16 }
  0x75   : > { %s307_s26 = sshll.u32 %s299_s15, 4  ;;  %s296_s28 = scalar_lea.sflag [#allocation9], %s1611_s9  ;;  %s1761_s26 = int_to_ptr.vmem [resolvable:$true] %s307_s26 }
  0x76   : > { %s1345_s7 = scalar_lea.hbm %s1757_s14, 256  ;;  %s1350_s13 = scalar_lea.hbm %s2059_s3, 512 }
  0x77   : > { %p1346_p3 = scmp.ne.s32.totalorder %s1757_s14, %s1345_s7  ;;  %p1351_p9 = scmp.lt.u32.totalorder %s1757_s14, %s2059_s3 }
  0x78   : > { %p1352_p12 = scmp.lt.u32.totalorder %s1350_s13, %s1345_s7  ;;  %p1354_p6 = scmp.lt.u32.totalorder %s1345_s7, %s1757_s14 }
  0x79   : > { %p1348_p10 = pnand %p1346_p3, %p1641_p4 }
  0x7a   : > { %p1353_p1 = por %p1352_p12, %p1351_p9 }
  0x7b   : > { %p1349_p8 = pneg %p1348_p10 }
  0x7c   : > { %p1355_p13 = por %p1354_p6, %p1353_p1 }
  0x7e   : > { %p1356_p11 = pnand %p1355_p13, %p1349_p8 }
  0x80   : > { %1359 = shalt.err (!%p1356_p11)
}
  0x81   : > { %s1360_s16 = scalar_lea.vmem %s1761_s26, 256  ;;  %s1506_s11 = smov [#allocation8]  }
  0x82   : > { %p1361_p2 = scmp.ne.s32.totalorder %s1761_s26, %s1360_s16  ;;  %s1365_s15 = sshll.u32 %s1506_s11, 4  ;;  %s1366_s15 = int_to_ptr.vmem [resolvable:$false] %s1365_s15 }
  0x83   : > { %s1367_s27 = scalar_lea.vmem %s1366_s15, 512  ;;  %p1368_p3 = scmp.lt.s32.totalorder %s1761_s26, %s1366_s15 }
  0x84   : > { %p1363_p5 = pnand %p1361_p2, %p1641_p4  ;;  %p1369_p10 = scmp.lt.s32.totalorder %s1367_s27, %s1360_s16 }
  0x86   : > { %p1364_p7 = pneg %p1363_p5  ;;  %p1370_p9 = por %p1369_p10, %p1368_p3 }
  0x88   : > { %p1371_p12 = pnand %p1370_p9, %p1364_p7 }
  0x8a   : > { %1374 = shalt.err (!%p1371_p12)
}
  0x8b   : > { %1190 = dma.hbm_to_vmem [thread:$0]  (!%p1617_p0), %s1757_s14, 256, %s1761_s26, %s296_s28, %s1504_s0, %s1504_s0, %s1505_s10  }
  0x8c   : > { %p2090_p4 = scmp.ne.s32.totalorder %s2084_s17, 0 }
  0x8d   : > { %s1793_s29 = sand.u32 (!%p2090_p4), 1, %s1481_s19   ;;  %p2091_p8 = scmp.ne.s32.totalorder (!%p2090_p4), %s2075_s30, 0 }
  0x8e   : > { %319 = sbr.rel (%p2090_p4) target bundleno = 229 (0xe5), region = 36  ;;  %s1796_s7 = sshll.u32 (!%p2090_p4), %s1793_s29, 3 }
  0x8f   : > { %s322_s12 = scalar_lea.sflag (!%p2090_p4), [#allocation3], %s1793_s29  ;;  %s1800_s1 = scalar_lea.vmem (!%p2090_p4), [#allocation2], %s1796_s7 }
  0x95   : > { %1456 = dma.done.wait (%p2091_p8), %s322_s12, 128  }
  0x96   : > { %1458 = vsyncadd (%p2091_p8), %s322_s12, 4294967168  ;;  %s330_s9 = sand.u32 1, %s1573_s24   ;;  %s1808_s0 = scalar_lea.vmem [#allocation5], %s1796_s7 }
  0x97   : > { %s331_s17 = scalar_lea.sflag [#allocation6], %s330_s9 }
  0x98   : > { %1460 = dma.done.wait (%p2091_p8), %s331_s17, 384  }
  0x99   : > { %1462 = vsyncadd (%p2091_p8), %s331_s17, 4294966912  ;;  %s1136_s10 = sshll.u32 %s1793_s29, 4  ;;  %s349_s26 = scalar_lea.sflag [#allocation9], %s1793_s29 }
  0x9a   : > { %s1815_s14 = scalar_lea.vmem [#allocation7], %s1136_s10  ;;  %s1818_s28 = scalar_lea.vmem [#allocation8], %s1136_s10 }
  0x9b   : > { %1464 = dma.done.wait (%p2091_p8), %s349_s26, 256  }
  0x9c   : > { %1466 = vsyncadd (%p2091_p8), %s349_s26, 4294967040  ;;  %v409_v0 = vlaneseq  ;;  %v1507_v1 = vmov 1966171168   ;;  %v399_v7 = vld [vmem:[%s1800_s1] sm:$0x3]  ;;  %s1906_s24 = scalar_lea.vmem [#allocation10], %s1796_s7 }
  0x9d   : > { %v407_v2 = vunpack.c.l.s4 %v1507_v1  ;;  %v400_v8 = vld [vmem:[%s1808_s0] sm:$0x3]  ;;  %v401_v9 = vld [vmem:[%s1815_s14] sm:$0xf]  ;;  %v1141_v15 = vld [vmem:[%s1808_s0 + $0x2] sm:$0x3] }
  0x9e   : > { %v410_v3 = vshrl.u32 %v409_v0, 7  ;;  %v1832_v10 = vld [vmem:[%s1818_s28] sm:$0xf]  ;;  %v1834_v11 = vadd.f32 %v400_v8, %v399_v7  ;;  %v1144_v19 = vld [vmem:[%s1800_s1 + $0x4] sm:$0x3]  ;;  %s909_s30 = sshll.u32 %s1906_s24, 4  ;;  %s1929_s30 = int_to_ptr.vmem [resolvable:$true] %s909_s30 }
  0x9f   : > { %v408_v4 = vunpack.c.0.s8 %v407_v2  ;;  %v1140_v14 = vld [vmem:[%s1800_s1 + $0x2] sm:$0x3]  ;;  %v1846_v20 = vadd.f32 %v1832_v10, %v401_v9  ;;  %v1145_v23 = vld [vmem:[%s1808_s0 + $0x4] sm:$0x3]  ;;  %v1148_v30 = vld [vmem:[%s1800_s1 + $0x6] sm:$0x3] }
  0xa0   : > { %v1826_v6 = vsub.s32 0, %v410_v3  ;;  %v1840_v16 = vadd.f32 %v1141_v15, %v1140_v14  ;;  %v1854_v28 = vadd.f32 %v1145_v23, %v1144_v19  ;;  %v1149_v31 = vld [vmem:[%s1808_s0 + $0x6] sm:$0x3]  ;;  %v1142_v42 = vld [vmem:[%s1815_s14 + $0x4] sm:$0xf]  ;;  %s1164_s13 = sshll.u32 %s1489_s21, 7 }
  0xa1   : > { %v1824_v5 = vsub.s32 %v408_v4, %v410_v3  ;;  %v1862_v35 = vadd.f32 %v1149_v31, %v1148_v30  ;;  %v1143_v43 = vld [vmem:[%s1818_s28 + $0x4] sm:$0xf]  ;;  %v1146_v48 = vld [vmem:[%s1815_s14 + $0x8] sm:$0xf]  ;;  %v1150_v60 = vld [vmem:[%s1815_s14 + $0xc] sm:$0xf]  ;;  %s1943_s16 = scalar_lea.hbm %s2060_s4, %s1164_s13 }
  0xa2   : > { %v1147_v51 = vld [vmem:[%s1818_s28 + $0x8] sm:$0xf]  ;;  %v1151_v3 = vld [vmem:[%s1818_s28 + $0xc] sm:$0xf]  ;;  %s890_s11 = scalar_lea.sflag [#allocation4], %s1793_s29  ;;  %s1375_s15 = scalar_lea.vmem %s1929_s30, 128 }
  0xa3   : > { %v412_v12 = vrot.slane %v399_v7, %v1824_v5  ;;  %v449_v13 = vrot.slane %v400_v8, %v1824_v5  ;;  %v533_v17 = vrot.slane %v1140_v14, %v1824_v5  ;;  %v570_v18 = vrot.slane %v1141_v15, %v1824_v5  ;;  %p1376_p0 = scmp.ne.s32.totalorder %s1929_s30, %s1375_s15  ;;  %p2092_p1 = scmp.ne.s32.totalorder %s2076_s6, 0 }
  0xa4   : > { %v654_v24 = vrot.slane %v1144_v19, %v1824_v5  ;;  %v691_v29 = vrot.slane %v1145_v23, %v1824_v5  ;;  %v775_v39 = vrot.slane %v1148_v30, %v1824_v5  ;;  %v812_v45 = vrot.slane %v1149_v31, %v1824_v5  ;;  %s1508_s27 = smov [#allocation10]  }
  0xa5   : > { %v420_v21 = vrot.slane %v412_v12, %v1824_v5  ;;  %v457_v22 = vrot.slane %v449_v13, %v1824_v5  ;;  %v413_v25 = vcombine.high %v412_v12, %v412_v12  ;;  %v541_v26 = vrot.slane %v533_v17, %v1824_v5  ;;  %p1377_p6 = pnand %p1376_p0, %p2092_p1  ;;  %s1379_s12 = sshll.u32 %s1508_s27, 4  ;;  %s1380_s12 = int_to_ptr.vmem [resolvable:$false] %s1379_s12 }
  0xa6   : > { %v578_v27 = vrot.slane %v570_v18, %v1824_v5  ;;  %v662_v34 = vrot.slane %v654_v24, %v1824_v5  ;;  %v699_v38 = vrot.slane %v691_v29, %v1824_v5  ;;  %v783_v50 = vrot.slane %v775_v39, %v1824_v5  ;;  %s1381_s1 = scalar_lea.vmem %s1380_s12, 256  ;;  %p1382_p11 = scmp.lt.s32.totalorder %s1929_s30, %s1380_s12 }
  0xa7   : > { %v431_v32 = vrot.slane %v420_v21, %v1826_v6  ;;  %v468_v33 = vrot.slane %v457_v22, %v1826_v6  ;;  %v552_v36 = vrot.slane %v541_v26, %v1826_v6  ;;  %v820_v53 = vrot.slane %v812_v45, %v1824_v5  ;;  %p1378_p13 = pneg %p1377_p6  ;;  %p1383_p2 = scmp.lt.s32.totalorder %s1381_s1, %s1375_s15 }
  0xa8   : > { %v589_v37 = vrot.slane %v578_v27, %v1826_v6  ;;  %v673_v44 = vrot.slane %v662_v34, %v1826_v6  ;;  %v710_v49 = vrot.slane %v699_v38, %v1826_v6  ;;  %v427_v54 = vrot.slane %v413_v25, %v1824_v5 }
  0xa9   : > { %v438_v40 = vmul.f32 %v431_v32, %v401_v9  ;;  %v475_v41 = vmul.f32 %v468_v33, %v1832_v10  ;;  %v559_v46 = vmul.f32 %v1142_v42, %v552_v36  ;;  %v450_v55 = vcombine.high %v449_v13, %v449_v13  ;;  %p1384_p5 = por %p1383_p2, %p1382_p11 }
  0xaa   : > { %v596_v47 = vmul.f32 %v1143_v43, %v589_v37  ;;  %v680_v52 = vmul.f32 %v1146_v48, %v673_v44  ;;  %v717_v58 = vmul.f32 %v1147_v51, %v710_v49  ;;  %v794_v59 = vrot.slane %v783_v50, %v1826_v6 }
  0xab   : > { %v561_v56 = vadd.f32 %v559_v46, %v438_v40  ;;  %v831_v61 = vrot.slane %v820_v53, %v1826_v6  ;;  %v435_v62 = vrot.slane %v427_v54, %v1826_v6  ;;  %v464_v63 = vrot.slane %v450_v55, %v1824_v5  ;;  %p1385_p7 = pnand %p1384_p5, %p1378_p13 }
  0xac   : > { %v598_v57 = vadd.f32 %v596_v47, %v475_v41  ;;  %v534_v0 = vcombine.high %v533_v17, %v533_v17  ;;  %v801_v4 = vmul.f32 %v1150_v60, %v794_v59  ;;  %v571_v7 = vcombine.high %v570_v18, %v570_v18 }
  0xad   : > { %v682_v1 = vadd.f32 %v680_v52, %v561_v56  ;;  %v838_v8 = vmul.f32 %v1151_v3, %v831_v61  ;;  %v439_v12 = vmul.f32 %v435_v62, %v401_v9  ;;  %v472_v13 = vrot.slane %v464_v63, %v1826_v6 }
  0xae   : > { %v719_v2 = vadd.f32 %v717_v58, %v598_v57  ;;  %v548_v14 = vrot.slane %v534_v0, %v1824_v5  ;;  %v585_v19 = vrot.slane %v571_v7, %v1824_v5  ;;  %v655_v21 = vcombine.high %v654_v24, %v654_v24 }
  0xaf   : > { %v1887_v15 = vadd.f32 %v801_v4, %v682_v1  ;;  %v692_v22 = vcombine.high %v691_v29, %v691_v29  ;;  %v476_v17 = vmul.f32 %v472_v13, %v1832_v10  ;;  %v776_v18 = vcombine.high %v775_v39, %v775_v39 }
  0xb0   : > { %v1890_v23 = vadd.f32 %v838_v8, %v719_v2  ;;  %v556_v25 = vrot.slane %v548_v14, %v1826_v6  ;;  %v593_v9 = vrot.slane %v585_v19, %v1826_v6  ;;  %v669_v26 = vrot.slane %v655_v21, %v1824_v5 }
  0xb1   : > { %v706_v27 = vrot.slane %v692_v22, %v1824_v5  ;;  %v813_v30 = vcombine.high %v812_v45, %v812_v45  ;;  %v790_v29 = vrot.slane %v776_v18, %v1824_v5  ;;  %v486_v32 = vrot.slane %v1834_v11, %v1824_v5 }
  0xb2   : > { %v879_v31 = vsub.f32 %v1887_v15, %v1890_v23  ;;  %v560_v24 = vmul.f32 %v1142_v42, %v556_v25  ;;  %v597_v10 = vmul.f32 %v1143_v43, %v593_v9  ;;  %v677_v33 = vrot.slane %v669_v26, %v1826_v6 }
  0xb3   : > { %v714_v34 = vrot.slane %v706_v27, %v1826_v6  ;;  %v827_v36 = vrot.slane %v813_v30, %v1824_v5  ;;  %v798_v38 = vrot.slane %v790_v29, %v1826_v6  ;;  %v494_v39 = vrot.slane %v486_v32, %v1824_v5 }
  0xb4   : > { %881 = vst [vmem:[%s1906_s24] sm:$0xf] %v879_v31  ;;  %v562_v37 = vadd.f32 %v560_v24, %v439_v12  ;;  %v1911_v40 = vadd.f32 %v1143_v43, %v1142_v42  ;;  %v599_v11 = vadd.f32 %v597_v10, %v476_v17  ;;  %v681_v41 = vmul.f32 %v1146_v48, %v677_v33 }
  0xb5   : > { %v718_v44 = vmul.f32 %v1147_v51, %v714_v34  ;;  %v835_v45 = vrot.slane %v827_v36, %v1826_v6  ;;  %v802_v46 = vmul.f32 %v1150_v60, %v798_v38  ;;  %v505_v47 = vrot.slane %v494_v39, %v1826_v6 }
  0xb6   : > { %v607_v49 = vrot.slane %v1840_v16, %v1824_v5  ;;  %v1918_v50 = vadd.f32 %v1147_v51, %v1146_v48  ;;  %v683_v52 = vadd.f32 %v681_v41, %v562_v37  ;;  %v728_v42 = vrot.slane %v1854_v28, %v1824_v5 }
  0xb7   : > { %v720_v53 = vadd.f32 %v718_v44, %v599_v11  ;;  %v839_v54 = vmul.f32 %v1151_v3, %v835_v45  ;;  %v512_v43 = vmul.f32 %v505_v47, %v1846_v20  ;;  %v1925_v56 = vadd.f32 %v1151_v3, %v1150_v60 }
  0xb8   : > { %v615_v55 = vrot.slane %v607_v49, %v1824_v5  ;;  %v849_v57 = vrot.slane %v1862_v35, %v1824_v5  ;;  %v1931_v16 = vadd.f32 %v802_v46, %v683_v52  ;;  %v736_v51 = vrot.slane %v728_v42, %v1824_v5 }
  0xb9   : > { %v1933_v48 = vadd.f32 %v839_v54, %v720_v53  ;;  %v487_v28 = vcombine.high %v486_v32, %v486_v32  ;;  %v608_v61 = vcombine.high %v607_v49, %v607_v49  ;;  %v729_v60 = vcombine.high %v728_v42, %v728_v42 }
  0xba   : > { %v626_v58 = vrot.slane %v615_v55, %v1826_v6  ;;  %v857_v59 = vrot.slane %v849_v57, %v1824_v5  ;;  %v747_v62 = vrot.slane %v736_v51, %v1826_v6  ;;  %v850_v0 = vcombine.high %v849_v57, %v849_v57 }
  0xbb   : > { %v880_v35 = vsub.f32 %v1931_v16, %v1933_v48  ;;  %v501_v63 = vrot.slane %v487_v28, %v1824_v5  ;;  %v622_v3 = vrot.slane %v608_v61, %v1824_v5  ;;  %v743_v4 = vrot.slane %v729_v60, %v1824_v5 }
  0xbc   : > { %v633_v1 = vmul.f32 %v626_v58, %v1911_v40  ;;  %v868_v2 = vrot.slane %v857_v59, %v1826_v6  ;;  %v754_v7 = vmul.f32 %v747_v62, %v1918_v50  ;;  %v864_v12 = vrot.slane %v850_v0, %v1824_v5 }
  0xbd   : > { %882 = vst [vmem:[%s1906_s24 + $0x4] sm:$0xf] %v880_v35  ;;  %v509_v8 = vrot.slane %v501_v63, %v1826_v6  ;;  %v630_v19 = vrot.slane %v622_v3, %v1826_v6  ;;  %v751_v21 = vrot.slane %v743_v4, %v1826_v6 }
  0xbe   : > { %v635_v13 = vadd.f32 %v633_v1, %v512_v43  ;;  %v875_v14 = vmul.f32 %v868_v2, %v1925_v56 }
  0xbf   : > { %1388 = shalt.err (!%p1385_p7)
}
  0xc0   : > { %s1389_s9 = scalar_lea.hbm %s1943_s16, 128  ;;  %s1393_s10 = scalar_lea.hbm %s2060_s4, 256 }
  0xc1   : > { %p1390_p3 = scmp.ne.s32.totalorder %s1943_s16, %s1389_s9  ;;  %p1394_p12 = scmp.lt.u32.totalorder %s1943_s16, %s2060_s4 }
  0xc2   : > { %p1395_p4 = scmp.lt.u32.totalorder %s1393_s10, %s1389_s9  ;;  %p1397_p0 = scmp.lt.u32.totalorder %s1389_s9, %s1943_s16 }
  0xc3   : > { %p1391_p10 = pnand %p1390_p3, %p2092_p1 }
  0xc4   : > { %p1396_p8 = por %p1395_p4, %p1394_p12 }
  0xc5   : > { %p1392_p9 = pneg %p1391_p10 }
  0xc6   : > { %p1398_p6 = por %p1397_p0, %p1396_p8 }
  0xc8   : > { %p1399_p13 = pnand %p1398_p6, %p1392_p9 }
  0xca   : > { %1402 = shalt.err (!%p1399_p13)
}
  0xcb   : > { %s1509_s28 = smov 64   ;;  %s1510_s24 = smov 4   ;;  %v513_v5 = vmul.f32 %v509_v8, %v1846_v20  ;;  %v872_v22 = vrot.slane %v864_v12, %v1826_v6  ;;  %v756_v17 = vadd.f32 %v754_v7, %v635_v13  ;;  %v634_v25 = vmul.f32 %v630_v19, %v1911_v40 }
  0xcc   : > { %1174 = dma.vmem_to_hbm [thread:$0]  (%p2092_p1), %s1929_s30, 128, %s1943_s16, %s890_s11, %s1509_s28, %s1509_s28, %s1510_s24   ;;  %v755_v18 = vmul.f32 %v751_v21, %v1918_v50 }
  0xcd   : > { %v877_v9 = vadd.f32 %v875_v14, %v756_v17  ;;  %v636_v26 = vadd.f32 %v634_v25, %v513_v5  ;;  %v876_v27 = vmul.f32 %v872_v22, %v1925_v56  ;;  %s398_s30 = scalar_lea.vmem [#allocation11], %s1796_s7  ;;  %s2004_s11 = scalar_lea.hbm %s2061_s5, %s1164_s13 }
  0xce   : > { %s926_s20 = sshll.u32 %s398_s30, 4  ;;  %s895_s7 = scalar_lea.sflag [#allocation12], %s1793_s29  ;;  %s1996_s20 = int_to_ptr.vmem [resolvable:$true] %s926_s20 }
  0xcf   : > { %v883_v30 = vsub.f32 %v877_v9, %v1887_v15  ;;  %v757_v31 = vadd.f32 %v755_v18, %v636_v26  ;;  %s1403_s15 = scalar_lea.vmem %s1996_s20, 128  ;;  %s1511_s27 = smov [#allocation11]  }
  0xd0   : > { %p1404_p11 = scmp.ne.s32.totalorder %s1996_s20, %s1403_s15  ;;  %s1407_s12 = sshll.u32 %s1511_s27, 4  ;;  %s1408_s12 = int_to_ptr.vmem [resolvable:$false] %s1407_s12 }
  0xd1   : > { %v885_v24 = vsub.f32 %v883_v30, %v1890_v23  ;;  %v878_v6 = vadd.f32 %v876_v27, %v757_v31  ;;  %s1409_s1 = scalar_lea.vmem %s1408_s12, 256  ;;  %p1410_p7 = scmp.lt.s32.totalorder %s1996_s20, %s1408_s12 }
  0xd2   : > { %p1405_p2 = pnand %p1404_p11, %p2092_p1  ;;  %p1411_p3 = scmp.lt.s32.totalorder %s1409_s1, %s1403_s15 }
  0xd3   : > { %887 = vst [vmem:[%s398_s30] sm:$0xf] %v885_v24  ;;  %v884_v20 = vsub.f32 %v878_v6, %v1931_v16 }
  0xd4   : > { %p1406_p5 = pneg %p1405_p2  ;;  %p1412_p10 = por %p1411_p3, %p1410_p7 }
  0xd5   : > { %v886_v29 = vsub.f32 %v884_v20, %v1933_v48 }
  0xd6   : > { %p1413_p9 = pnand %p1412_p10, %p1406_p5 }
  0xd7   : > { %888 = vst [vmem:[%s398_s30 + $0x4] sm:$0xf] %v886_v29 }
  0xd8   : > { %1416 = shalt.err (!%p1413_p9)
}
  0xd9   : > { %s1417_s21 = scalar_lea.hbm %s2004_s11, 128  ;;  %s1421_s17 = scalar_lea.hbm %s2061_s5, 256 }
  0xda   : > { %p1418_p12 = scmp.ne.s32.totalorder %s2004_s11, %s1417_s21  ;;  %p1422_p0 = scmp.lt.u32.totalorder %s2004_s11, %s2061_s5 }
  0xdb   : > { %p1423_p6 = scmp.lt.u32.totalorder %s1421_s17, %s1417_s21  ;;  %p1425_p11 = scmp.lt.u32.totalorder %s1417_s21, %s2004_s11 }
  0xdc   : > { %p1419_p4 = pnand %p1418_p12, %p2092_p1 }
  0xdd   : > { %p1424_p13 = por %p1423_p6, %p1422_p0 }
  0xde   : > { %p1420_p8 = pneg %p1419_p4 }
  0xdf   : > { %p1426_p2 = por %p1425_p11, %p1424_p13 }
  0xe1   : > { %p1427_p5 = pnand %p1426_p2, %p1420_p8 }
  0xe3   : > { %1430 = shalt.err (!%p1427_p5)
}
  0xe4   : > { %1175 = dma.vmem_to_hbm [thread:$0]  (%p2092_p1), %s1996_s20, 128, %s2004_s11, %s895_s7, %s1509_s28, %s1509_s28, %s1510_s24  }
  0xe5 PF: > { %s941_s14 = sand.u32 1, %s1477_s18   ;;  %p2093_p7 = scmp.ne.s32.totalorder %s2078_s8, 0 }
  0xe6   : > { %p2094_p3 = scmp.ge.s32.totalorder %s1497_s23, 2  ;;  %s942_s26 = scalar_lea.sflag [#allocation4], %s941_s14 }
  0xe8   : > { %p1192_p10 = pnand %p2094_p3, %p2093_p7 }
  0xea   : > { %1468 = dma.done.wait (!%p1192_p10), %s942_s26, 128  }
  0xeb   : > { %1470 = vsyncadd (!%p1192_p10), %s942_s26, 4294967168  ;;  %s951_s6 = scalar_lea.sflag [#allocation12], %s941_s14 }
  0xec   : > { %1472 = dma.done.wait (!%p1192_p10), %s951_s6, 128  }
  0xed   : > { %1474 = vsyncadd (!%p1192_p10), %s951_s6, 4294967168  ;;  %s31_s23 = sadd.s32 1, %s1497_s23   ;;  %s2095_s29 = sld [smem:[#allocation18_spill]] }
  0xee   : > { %p28_p9 = scmp.ge.s32.totalorder %s31_s23, 4   ;;  %s2096_s20 = sld [smem:[#allocation20_spill]] }
  0xef   : > { %s2097_s28 = sld [smem:[#allocation19_spill]]  ;;  %s2098_s18 = smov %s1481_s19 }
  0xf0   : > { %s2100_s21 = smov %s1493_s22  ;;  %30 = sbr.rel (!%p28_p9) target bundleno = 15 (0xf), region = 147 }
  0xf3   : > { %s2099_s19 = smov %s2095_s29 }
  0xf5   : > { %s2101_s22 = smov %s2097_s28 }
  0xf7   :  { %956 = vsyncpa [#allocation3], 1 }
  0xf8   :  { %958 = vsyncpa [#allocation3 + $0x1], 1 }
  0xf9   :  { %959 = vsyncpa [#allocation6], 1 }
  0xfa   :  { %961 = vsyncpa [#allocation6 + $0x1], 1 }
  0xfb   :  { %962 = vsyncpa [#allocation9], 1 }
  0xfc   :  { %964 = vsyncpa [#allocation9 + $0x1], 1 }
  0xfd   :  { %965 = vsyncpa [#allocation4], 1 }
  0xfe   :  { %967 = vsyncpa [#allocation4 + $0x1], 1 }
  0xff   :  { %968 = vsyncpa [#allocation12], 1 }
 0x100   :  { %970 = vsyncpa [#allocation12 + $0x1], 1 }

</bundles_post_ra>
